<compile_context>
chip_gen: v7x
topology: tpu7x:2x2x1
jax: 0.10.0
libtpu: 0.0.40
codegen_flags: <defaults>
</compile_context>

<pallas_src>
import jax
import jax.numpy as jnp
from jax.experimental import pallas as pl
from jax.experimental.pallas import tpu as pltpu


def _round_up(x, m):
    return (x + m - 1) // m * m


def _round_down(x, m):
    return max(m, x // m * m)


def _tpu_vmem_capacity_bytes():
    """Physical VMEM per TensorCore (128 MiB on v5e/v6e, 64 MiB on v7x)."""
    try:
        return int(pltpu.get_tpu_info().vmem_capacity_bytes)
    except Exception:
        pass
    try:
        kind = jax.devices()[0].device_kind.lower()
        if "v7" in kind:
            return 64 * 1024 * 1024
        if "v4" in kind or "v5" in kind or "v6" in kind:
            return 128 * 1024 * 1024
    except Exception:
        pass
    return 64 * 1024 * 1024  # conservative default


def _linear_kernel(x_ref, w_ref, b_ref, o_ref):
    # In-kernel cast of the f32 x tile to the pre-cast weight dtype (bf16):
    # the VPU cast is hidden under the x DMA and saves a wrapper-side HBM
    # round trip.  One MXU matmul per tile, f32 accumulation + f32 bias add.
    x = x_ref[...].astype(w_ref.dtype)
    acc = jnp.dot(x, w_ref[...], preferred_element_type=jnp.float32)
    o_ref[...] = (acc + b_ref[...]).astype(o_ref.dtype)


def prepare_linear_params(weight, bias, compute_dtype=jnp.bfloat16):
    """One-time parameter prep (hoisted out of the per-call path):
    transpose to (dim, num_labels), zero-pad labels to a lane-dense multiple
    of 128, cast the weight to the compute dtype.  Bias stays f32."""
    num_labels, dim = weight.shape
    n_pad = _round_up(num_labels, 128)
    w_t = jnp.zeros((dim, n_pad), dtype=compute_dtype)
    w_t = w_t.at[:, :num_labels].set(weight.T.astype(compute_dtype))
    b2d = jnp.zeros((1, n_pad), dtype=jnp.float32)
    b2d = b2d.at[:, :num_labels].set(bias.astype(jnp.float32))
    return w_t, b2d, num_labels


def linear_classifier_forward(x, w_t, b2d, num_labels):
    """x: (B, ...) frozen features (f32); w_t: (dim, N_pad) compute-dtype;
    b2d: (1, N_pad) f32.  Returns (B, num_labels) f32 logits."""
    B = x.shape[0]
    x2d = x.reshape(B, -1)                  # flatten; stays f32 (cast in-kernel)
    dim, n_pad = w_t.shape
    assert x2d.shape[1] == dim

    x_itemsize = jnp.dtype(x2d.dtype).itemsize      # 4 (f32 stream)
    w_itemsize = jnp.dtype(w_t.dtype).itemsize      # 2 (bf16 resident weight)

    # Generation-aware VMEM budget / ceiling.
    vmem_cap = _tpu_vmem_capacity_bytes()
    if vmem_cap <= 64 * 1024 * 1024:                 # v7x-class: 64 MiB / TC
        budget = 44 * 1024 * 1024
        vmem_ceiling = 56 * 1024 * 1024              # leave headroom for Mosaic scratch
    else:                                            # v5e / v6e: 128 MiB / TC
        budget = 96 * 1024 * 1024
        vmem_ceiling = 100 * 1024 * 1024

    def footprint(tb, w_bufs):
        return (2 * tb * dim * x_itemsize            # x tiles (double-buffered, f32)
                + w_bufs * dim * n_pad * w_itemsize  # resident weight
                + 2 * tb * n_pad * 4                 # out tiles (double-buffered, f32)
                + w_bufs * n_pad * 4)                # resident bias

    # --- Tile selection ----------------------------------------------------
    # Largest batch tile that fits the budget with the weight single-buffered,
    # while keeping >= MIN_STEPS grid steps for large batches (megacore work
    # split + DMA/compute overlap), preferring an even step count.
    MIN_STEPS = 4
    b_cap = _round_up(max(B, 1), 8)                  # minimum sublane granule
    if B >= 16 * MIN_STEPS:
        step_cap = _round_down(B // MIN_STEPS, 16)
    else:
        step_cap = b_cap

    tile_b = 8
    for cand in (2048, 1024, 512, 256, 128, 64, 32, 16, 8):
        tb = min(cand, b_cap, step_cap)
        if footprint(tb, w_bufs=1) <= budget:
            tile_b = tb
            break
    # TODO(synk): if dim*N_pad alone exceeds the VMEM budget (huge flattened
    # dim) a K grid axis with an f32 accumulator scratch is needed; not
    # required for linear-probe dims.

    steps = pl.cdiv(B, tile_b)
    if steps > 1 and steps % 2 == 1:
        # Nudge toward an even step count (v7x: 2 TCs) with a minimal tile cut.
        tb_even = _round_up(pl.cdiv(B, steps + 1), 8)
        if (tb_even >= 8 and footprint(tb_even, w_bufs=1) <= budget
                and pl.cdiv(B, tb_even) % 2 == 0):
            tile_b = tb_even
            steps = pl.cdiv(B, tile_b)

    grid = (steps,)   # ragged last block: OOB rows are never written back

    flops = 2 * B * dim * n_pad
    bytes_accessed = (B * dim * x_itemsize + dim * n_pad * w_itemsize
                      + n_pad * 4 + B * n_pad * 4)
    cost = pl.CostEstimate(flops=flops, bytes_accessed=bytes_accessed,
                           transcendentals=0)

    def build_call(single_buffer_resident):
        w_bufs = 1 if single_buffer_resident else 2
        need = footprint(tile_b, w_bufs=w_bufs)
        vmem_limit = int(max(32 * 1024 * 1024,
                             min(need + (8 << 20), vmem_ceiling)))
        resident_kwargs = (dict(pipeline_mode=pl.Buffered(1))
                           if single_buffer_resident else {})
        return pl.pallas_call(
            _linear_kernel,
            out_shape=jax.ShapeDtypeStruct((B, n_pad), jnp.float32),
            grid_spec=pltpu.PrefetchScalarGridSpec(
                num_scalar_prefetch=0,
                grid=grid,
                in_specs=[
                    pl.BlockSpec((tile_b, dim), lambda i: (i, 0)),     # streamed x (f32)
                    pl.BlockSpec((dim, n_pad), lambda i: (0, 0),
                                 **resident_kwargs),                   # resident W (bf16)
                    pl.BlockSpec((1, n_pad), lambda i: (0, 0),
                                 **resident_kwargs),                   # resident bias
                ],
                out_specs=pl.BlockSpec((tile_b, n_pad), lambda i: (i, 0)),
            ),
            compiler_params=pltpu.CompilerParams(
                dimension_semantics=("parallel",),   # v7x: 2 TCs split the batch
                vmem_limit_bytes=vmem_limit,
            ),
            cost_estimate=cost,
        )

    try:
        out = build_call(single_buffer_resident=True)(x2d, w_t, b2d)
    except Exception:
        # Fallback if this Pallas version rejects Buffered(1) on the top-level
        # pipeline: default double-buffering only costs extra VMEM.
        out = build_call(single_buffer_resident=False)(x2d, w_t, b2d)

    # Only the lane-pad columns are sliced off (no batch pad was added).
    # Consumers that can handle padded / bf16 logits could skip this slice /
    # request a bf16 out_shape to shave output writeback further.
    return out[:, :num_labels]


if __name__ == "__main__":
    key = jax.random.PRNGKey(0)
    k_x, k_w = jax.random.split(key)

    # Small frozen-feature input: (batch=2, channels=4, spatial=16x16) -> dim=1024
    B, C, H, W = 2, 4, 16, 16
    dim = C * H * W
    num_labels = 16

    x = jax.random.normal(k_x, (B, C, H, W), dtype=jnp.float32)

    # Deterministic parameter init matching the PyTorch module:
    # weight.normal_(mean=0.0, std=0.01), bias.zero_()
    weight = 0.01 * jax.random.normal(k_w, (num_labels, dim), dtype=jnp.float32)
    bias = jnp.zeros((num_labels,), dtype=jnp.float32)

    # One-time param prep (transpose + lane pad + bf16 cast), hoisted out of
    # the per-call path.
    w_t, b2d, nl = prepare_linear_params(weight, bias, compute_dtype=jnp.bfloat16)

    y = linear_classifier_forward(x, w_t, b2d, nl)
    y = jax.block_until_ready(y)
    assert y.shape == (B, num_labels)

    # Reference 1: same bf16-rounded inputs, f32 accumulation (matches MXU path).
    x2d = x.reshape(B, -1)
    y_ref_bf16 = (x2d.astype(jnp.bfloat16).astype(jnp.float32)
                  @ weight.T.astype(jnp.bfloat16).astype(jnp.float32)) + bias
    assert jnp.allclose(y, y_ref_bf16, atol=2e-3, rtol=2e-3), "mismatch vs bf16 reference"

    # Reference 2: pure-f32 PyTorch-equivalent, loose tolerance for bf16 matmul.
    y_ref_f32 = x2d @ weight.T + bias
    assert jnp.allclose(y, y_ref_f32, atol=2e-2, rtol=2e-2), "mismatch vs f32 reference"

    print("KERNEL_OK")
</pallas_src>

<mosaic_0001>
module attributes {stable_mosaic.version = 11 : i64} {
  func.func @_linear_kernel(%arg0: i32, %arg1: memref<8x1024xf32, #tpu.memory_space<vmem>>, %arg2: memref<1024x128xbf16, #tpu.memory_space<vmem>>, %arg3: memref<1x128xf32, #tpu.memory_space<vmem>>, %arg4: memref<8x128xf32, #tpu.memory_space<vmem>>) attributes {dimension_semantics = [#tpu.dimension_semantics<parallel>], iteration_bounds = array<i64: 1>, scalar_prefetch = 0 : i64, scratch_operands = 0 : i64, tpu.core_type = #tpu.core_type<tc>, window_params = [{transform_indices = @transform_0, window_bounds = array<i64: 8, 1024>}, {pipeline_mode = #tpu.pipeline_mode<synchronous>, transform_indices = @transform_1, window_bounds = array<i64: 1024, 128>}, {pipeline_mode = #tpu.pipeline_mode<synchronous>, transform_indices = @transform_2, window_bounds = array<i64: 1, 128>}, {transform_indices = @transform_3, window_bounds = array<i64: 8, 128>}]} {
    %c0 = arith.constant 0 : index
    %c0_0 = arith.constant 0 : index
    %0 = vector.load %arg1[%c0, %c0_0] : memref<8x1024xf32, #tpu.memory_space<vmem>>, vector<8x1024xf32>
    %1 = arith.truncf %0 : vector<8x1024xf32> to vector<8x1024xbf16>
    %c0_1 = arith.constant 0 : index
    %c0_2 = arith.constant 0 : index
    %2 = vector.load %arg2[%c0_1, %c0_2] : memref<1024x128xbf16, #tpu.memory_space<vmem>>, vector<1024x128xbf16>
    %cst = arith.constant dense<0.000000e+00> : vector<8x128xf32>
    %3 = tpu.matmul %1, %2, %cst {dimension_numbers = #tpu.dot_dimension_numbers<[1], [0], [0], [1], [0, 0, 1, 1], [], []>} : vector<8x1024xbf16>, vector<1024x128xbf16>, vector<8x128xf32> -> vector<8x128xf32>
    %c0_3 = arith.constant 0 : index
    %c0_4 = arith.constant 0 : index
    %4 = vector.load %arg3[%c0_3, %c0_4] : memref<1x128xf32, #tpu.memory_space<vmem>>, vector<1x128xf32>
    %5 = vector.broadcast %4 : vector<1x128xf32> to vector<8x128xf32>
    %6 = arith.addf %3, %5 : vector<8x128xf32>
    %c0_5 = arith.constant 0 : index
    %c0_6 = arith.constant 0 : index
    %7 = vector.load %arg4[%c0_5, %c0_6] : memref<8x128xf32, #tpu.memory_space<vmem>>, vector<8x128xf32>
    tpu.vector_store %arg4[%c0_5, %c0_6], %6 {strides = array<i32>} : memref<8x128xf32, #tpu.memory_space<vmem>>, vector<8x128xf32>,
    return
  }
  func.func @transform_0(%arg0: i32) -> (i32, i32) {
    %c0_i32 = arith.constant 0 : i32
    %c0_i32_0 = arith.constant 0 : i32
    return %arg0, %c0_i32 : i32, i32
  }
  func.func @transform_1(%arg0: i32) -> (i32, i32) {
    %c0_i32 = arith.constant 0 : i32
    %c0_i32_0 = arith.constant 0 : i32
    %c0_i32_1 = arith.constant 0 : i32
    return %c0_i32, %c0_i32_0 : i32, i32
  }
  func.func @transform_2(%arg0: i32) -> (i32, i32) {
    %c0_i32 = arith.constant 0 : i32
    %c0_i32_0 = arith.constant 0 : i32
    %c0_i32_1 = arith.constant 0 : i32
    return %c0_i32, %c0_i32_0 : i32, i32
  }
  func.func @transform_3(%arg0: i32) -> (i32, i32) {
    %c0_i32 = arith.constant 0 : i32
    %c0_i32_0 = arith.constant 0 : i32
    return %arg0, %c0_i32 : i32, i32
  }
}

module attributes {stable_mosaic.version = 11 : i64} {
  func.func @_linear_kernel(%arg0: i32, %arg1: memref<8x1024xf32, #tpu.memory_space<vmem>>, %arg2: memref<1024x128xbf16, #tpu.memory_space<vmem>>, %arg3: memref<1x128xf32, #tpu.memory_space<vmem>>, %arg4: memref<8x128xf32, #tpu.memory_space<vmem>>) attributes {dimension_semantics = [#tpu.dimension_semantics<parallel>], iteration_bounds = array<i64: 1>, scalar_prefetch = 0 : i64, scratch_operands = 0 : i64, tpu.core_type = #tpu.core_type<tc>, window_params = [{transform_indices = @transform_0, window_bounds = array<i64: 8, 1024>}, {pipeline_mode = #tpu.pipeline_mode<synchronous>, transform_indices = @transform_1, window_bounds = array<i64: 1024, 128>}, {pipeline_mode = #tpu.pipeline_mode<synchronous>, transform_indices = @transform_2, window_bounds = array<i64: 1, 128>}, {transform_indices = @transform_3, window_bounds = array<i64: 8, 128>}]} {
    %c0 = arith.constant 0 : index
    %c0_0 = arith.constant 0 : index
    %0 = vector.load %arg1[%c0, %c0_0] : memref<8x1024xf32, #tpu.memory_space<vmem>>, vector<8x1024xf32>
    %1 = arith.truncf %0 : vector<8x1024xf32> to vector<8x1024xbf16>
    %c0_1 = arith.constant 0 : index
    %c0_2 = arith.constant 0 : index
    %2 = vector.load %arg2[%c0_1, %c0_2] : memref<1024x128xbf16, #tpu.memory_space<vmem>>, vector<1024x128xbf16>
    %cst = arith.constant dense<0.000000e+00> : vector<8x128xf32>
    %3 = tpu.matmul %1, %2, %cst {dimension_numbers = #tpu.dot_dimension_numbers<[1], [0], [0], [1], [0, 0, 1, 1], [], []>} : vector<8x1024xbf16>, vector<1024x128xbf16>, vector<8x128xf32> -> vector<8x128xf32>
    %c0_3 = arith.constant 0 : index
    %c0_4 = arith.constant 0 : index
    %4 = vector.load %arg3[%c0_3, %c0_4] : memref<1x128xf32, #tpu.memory_space<vmem>>, vector<1x128xf32>
    %5 = vector.broadcast %4 : vector<1x128xf32> to vector<8x128xf32>
    %6 = arith.addf %3, %5 : vector<8x128xf32>
    %c0_5 = arith.constant 0 : index
    %c0_6 = arith.constant 0 : index
    %7 = vector.load %arg4[%c0_5, %c0_6] : memref<8x128xf32, #tpu.memory_space<vmem>>, vector<8x128xf32>
    tpu.vector_store %arg4[%c0_5, %c0_6], %6 {strides = array<i32>} : memref<8x128xf32, #tpu.memory_space<vmem>>, vector<8x128xf32>,
    return
  }
  func.func @transform_0(%arg0: i32) -> (i32, i32) {
    %c0_i32 = arith.constant 0 : i32
    %c0_i32_0 = arith.constant 0 : i32
    return %arg0, %c0_i32 : i32, i32
  }
  func.func @transform_1(%arg0: i32) -> (i32, i32) {
    %c0_i32 = arith.constant 0 : i32
    %c0_i32_0 = arith.constant 0 : i32
    %c0_i32_1 = arith.constant 0 : i32
    return %c0_i32, %c0_i32_0 : i32, i32
  }
  func.func @transform_2(%arg0: i32) -> (i32, i32) {
    %c0_i32 = arith.constant 0 : i32
    %c0_i32_0 = arith.constant 0 : i32
    %c0_i32_1 = arith.constant 0 : i32
    return %c0_i32, %c0_i32_0 : i32, i32
  }
  func.func @transform_3(%arg0: i32) -> (i32, i32) {
    %c0_i32 = arith.constant 0 : i32
    %c0_i32_0 = arith.constant 0 : i32
    return %arg0, %c0_i32 : i32, i32
  }
}

</mosaic_0001>

<bundles_post_ra>
// kernel: tpu_custom_call.1
= control target key start
LH: loop header
LB: loop body
LE: loop exit
PB: predicated region body
PF: predicated region fallthrough
CT: control target
= control target key end

     0   :  { %8 = vsyncpa [#allocation3], 0  ;;  %s1236_s0 = inlined_call_operand.hbm [shape: f32[2,1024], index: 0, kind: input, shape index: {}]   ;;  %s1237_s1 = inlined_call_operand.hbm [shape: bf16[1024,128], index: 1, kind: input, shape index: {}]   ;;  %s1238_s2 = inlined_call_operand.vmem [shape: f32[1,128], index: 2, kind: input, shape index: {}]   ;;  %s1239_s3 = inlined_call_operand.hbm [shape: f32[2,128], index: 3, kind: output, shape index: {}]  }
   0x1   :  { %9 = vsyncpa [#allocation6], 0 }
   0x2   :  { %10 = vsyncpa [#allocation4], 0 }
   0x3   :  { %15 = vsyncadd [#allocation3], 768  ;;  %s1157_s12 = smov [#allocation2]   ;;  %s1085_s16 = scalar_lea.hbm %s1236_s0, 256 }
   0x4   :  { %s16_s13 = sshll.u32 %s1157_s12, 4  ;;  %p1086_p0 = scmp.ne.s32.totalorder %s1236_s0, %s1085_s16  ;;  %s17_s13 = int_to_ptr.vmem [resolvable:$true] %s16_s13 }
   0x5   :  { %p1089_p1 = scmp.lt.u32.totalorder %s1085_s16, %s1236_s0 }
   0x7   :  { %p1091_p2 = pnand %p1089_p1, %p1086_p0 }
   0x9   :  { %1094 = shalt.err (!%p1091_p2)
}
   0xa   :  { %s1095_s21 = scalar_lea.vmem %s17_s13, 256  ;;  %s1099_s22 = scalar_lea.vmem %s17_s13, 1024 }
   0xb   :  { %p1096_p3 = scmp.ne.s32.totalorder %s17_s13, %s1095_s21  ;;  %p1100_p4 = scmp.lt.s32.totalorder %s17_s13, %s17_s13 }
   0xc   :  { %p1101_p5 = scmp.lt.s32.totalorder %s1099_s22, %s1095_s21 }
   0xe   :  { %p1102_p6 = por %p1101_p5, %p1100_p4 }
  0x10   :  { %p1103_p7 = pnand %p1102_p6, %p1096_p3 }
  0x12   :  { %1106 = shalt.err (!%p1103_p7)
}
  0x13   :  { %s1158_s23 = smov 256   ;;  %s1159_s24 = smov 16  }
  0x14   :  { %22 = dma.hbm_to_vmem [thread:$0]  %s1236_s0, 256, %s17_s13, [#allocation3], %s1158_s23, %s1158_s23, %s1159_s24  }
  0x15   :  { %s1160_s27 = smov [#allocation5]   ;;  %s1107_s4 = scalar_lea.hbm %s1237_s1, 8192 }
  0x16   :  { %s28_s28 = sshll.u32 %s1160_s27, 4  ;;  %p1108_p8 = scmp.ne.s32.totalorder %s1237_s1, %s1107_s4  ;;  %s29_s28 = int_to_ptr.vmem [resolvable:$true] %s28_s28 }
  0x17   :  { %p1111_p9 = scmp.lt.u32.totalorder %s1107_s4, %s1237_s1 }
  0x19   :  { %p1113_p10 = pnand %p1111_p9, %p1108_p8 }
  0x1b   :  { %1116 = shalt.err (!%p1113_p10)
}
  0x1c   :  { %s1117_s9 = scalar_lea.vmem %s29_s28, 8192  ;;  %p1122_p12 = scmp.lt.s32.totalorder %s29_s28, %s29_s28 }
  0x1d   :  { %p1118_p11 = scmp.ne.s32.totalorder %s29_s28, %s1117_s9  ;;  %p1123_p13 = scmp.lt.s32.totalorder %s1117_s9, %s1117_s9 }
  0x1f   :  { %p1124_p0 = por %p1123_p13, %p1122_p12 }
  0x21   :  { %p1125_p1 = pnand %p1124_p0, %p1118_p11 }
  0x23   :  { %1128 = shalt.err (!%p1125_p1)
}
  0x24   :  { %s1161_s0 = smov 64   ;;  %s1162_s10 = smov 4  }
  0x25   :  { %34 = dma.hbm_to_vmem [thread:$0]  %s1237_s1, 8192, %s29_s28, [#allocation6], %s1161_s0, %s1161_s0, %s1162_s10  }
  0x26   :  { %1151 = dma.done.wait [#allocation3], 1024  }
  0x27   :  { %1152 = vsyncadd [#allocation3], 4294966272 }
  0x28   :  { %1153 = dma.done.wait [#allocation6], 8192  }
  0x29   :  { %1154 = vsyncadd [#allocation6], 4294959104  ;;  %v1009_v0 = vld [vmem:[#allocation5 + $0x40] sm:$0xff]   ;;  %v1013_v4 = vld [vmem:[#allocation5 + $0x48] sm:$0xff]   ;;  %v1163_v24 = vmov 1983009808   ;;  %v67_v26 = vlaneseq }
  0x2a   :  { %v1010_v1 = vld [vmem:[#allocation5 + $0xc0] sm:$0xff]   ;;  %911 = vmatprep.subr.bf16.mxu0 %v1009_v0  ;;  %v1014_v5 = vld [vmem:[#allocation5 + $0xc8] sm:$0xff]   ;;  %v1017_v8 = vld [vmem:[#allocation5 + $0x50] sm:$0xff]   ;;  %v65_v25 = vunpack.c.l.s4 %v1163_v24 }
  0x2b   :  { %v1011_v2 = vld [vmem:[#allocation5] sm:$0xff]   ;;  %933 = vmatprep.subr.bf16.mxu1 %v1010_v1  ;;  %v1015_v6 = vld [vmem:[#allocation5 + $0x8] sm:$0xff]   ;;  %v1018_v9 = vld [vmem:[#allocation5 + $0xd0] sm:$0xff]   ;;  %v68_v32 = vshrl.u32 %v67_v26, 7 }
  0x2c   :  { %v1012_v3 = vld [vmem:[#allocation5 + $0x80] sm:$0xff]   ;;  %912 = vmatpush3.bf16.msra.mxu0 %v1011_v2  ;;  %v1016_v7 = vld [vmem:[#allocation5 + $0x88] sm:$0xff]   ;;  %v1019_v10 = vld [vmem:[#allocation5 + $0x10] sm:$0xff]   ;;  %v66_v31 = vunpack.c.0.s8 %v65_v25 }
  0x2d   :  { %934 = vmatpush3.bf16.msra.mxu1 %v1012_v3  ;;  %913 = vmatprep.subr.bf16.mxu0 %v1013_v4  ;;  %v1020_v11 = vld [vmem:[#allocation5 + $0x90] sm:$0xff]   ;;  %v1021_v12 = vld [vmem:[#allocation5 + $0x58] sm:$0xff]   ;;  %v1025_v16 = vld [vmem:[#allocation5 + $0x60] sm:$0xff]  }
  0x2e   :  { %935 = vmatprep.subr.bf16.mxu1 %v1014_v5  ;;  %v1022_v13 = vld [vmem:[#allocation5 + $0xd8] sm:$0xff]   ;;  %v1026_v17 = vld [vmem:[#allocation5 + $0xe0] sm:$0xff]   ;;  %v1029_v20 = vld [vmem:[#allocation5 + $0x68] sm:$0xff]   ;;  %v1211_v37 = vsub.s32 %v66_v31, %v68_v32 }
  0x2f   :  { %v1023_v14 = vld [vmem:[#allocation5 + $0x18] sm:$0xff]   ;;  %v1027_v18 = vld [vmem:[#allocation5 + $0x20] sm:$0xff]   ;;  %v1030_v21 = vld [vmem:[#allocation5 + $0xe8] sm:$0xff]  }
  0x30   :  { %914 = vmatpush3.bf16.msra.mxu0 %v1015_v6  ;;  %v1024_v15 = vld [vmem:[#allocation5 + $0x98] sm:$0xff]   ;;  %v1028_v19 = vld [vmem:[#allocation5 + $0xa0] sm:$0xff]   ;;  %v1031_v22 = vld [vmem:[#allocation5 + $0x28] sm:$0xff]  }
  0x31   :  { %936 = vmatpush3.bf16.msra.mxu1 %v1016_v7  ;;  %915 = vmatprep.subr.bf16.mxu0 %v1017_v8  ;;  %v1032_v23 = vld [vmem:[#allocation5 + $0xa8] sm:$0xff]   ;;  %v1033_v27 = vld [vmem:[#allocation5 + $0x70] sm:$0xff]   ;;  %v1037_v33 = vld [vmem:[#allocation5 + $0x78] sm:$0xff]  }
  0x32   :  { %937 = vmatprep.subr.bf16.mxu1 %v1018_v9  ;;  %v1034_v28 = vld [vmem:[#allocation5 + $0xf0] sm:$0xff]   ;;  %v1038_v34 = vld [vmem:[#allocation5 + $0xf8] sm:$0xff]   ;;  %v1047_v44 = vld [vmem:[#allocation5 + $0x140] sm:$0xff]  }
  0x33   :  { %v1035_v29 = vld [vmem:[#allocation5 + $0x30] sm:$0xff]   ;;  %v1039_v35 = vld [vmem:[#allocation5 + $0x38] sm:$0xff]   ;;  %v1048_v47 = vld [vmem:[#allocation5 + $0x1c0] sm:$0xff]  }
  0x34   :  { %916 = vmatpush3.bf16.msra.mxu0 %v1019_v10  ;;  %v1036_v30 = vld [vmem:[#allocation5 + $0xb0] sm:$0xff]   ;;  %v1040_v36 = vld [vmem:[#allocation5 + $0xb8] sm:$0xff]   ;;  %v1049_v50 = vld [vmem:[#allocation5 + $0x100] sm:$0xff]  }
  0x35   :  { %938 = vmatpush3.bf16.msra.mxu1 %v1020_v11  ;;  %917 = vmatprep.subr.bf16.mxu0 %v1021_v12  ;;  %v1041_v38 = vld [vmem:[#allocation2] ss:$16 sps:$4 sm:$0xff]   ;;  %v1045_v40 = vld [vmem:[#allocation2 + $0x4] ss:$16 sps:$4 sm:$0xff]   ;;  %v1051_v56 = vld [vmem:[#allocation5 + $0x148] sm:$0xff]  }
  0x36   :  { %939 = vmatprep.subr.bf16.mxu1 %v1022_v13  ;;  %v1043_v39 = vld [vmem:[#allocation2 + $0x20] ss:$16 sps:$4 sm:$0xff]   ;;  %v1046_v41 = vld [vmem:[#allocation2 + $0x24] ss:$16 sps:$4 sm:$0xff]   ;;  %v70_v42 = vrot.slane %v1041_v38, %v1211_v37  ;;  %v77_v45 = vrot.slane %v1045_v40, %v1211_v37  ;;  %v1052_v59 = vld [vmem:[#allocation5 + $0x1c8] sm:$0xff]  }
  0x37   :  { %v84_v43 = vrot.slane %v1043_v39, %v1211_v37  ;;  %v91_v46 = vrot.slane %v1046_v41, %v1211_v37  ;;  %v1050_v53 = vld [vmem:[#allocation5 + $0x180] sm:$0xff]   ;;  %v1053_v60 = vld [vmem:[#allocation5 + $0x108] sm:$0xff]   ;;  %v1055_v62 = vld [vmem:[#allocation5 + $0x150] sm:$0xff]  }
  0x38   :  { %918 = vmatpush3.bf16.msra.mxu0 %v1023_v14  ;;  %v1054_v61 = vld [vmem:[#allocation5 + $0x188] sm:$0xff]   ;;  %v1056_v63 = vld [vmem:[#allocation5 + $0x1d0] sm:$0xff]   ;;  %v1059_v2 = vld [vmem:[#allocation5 + $0x158] sm:$0xff]  }
  0x39   :  { %940 = vmatpush3.bf16.msra.mxu1 %v1024_v15  ;;  %919 = vmatprep.subr.bf16.mxu0 %v1025_v16  ;;  %v93_v48 = vcombine.high %v70_v42, %v84_v43  ;;  %v92_v49 = vcombine.low %v70_v42, %v84_v43  ;;  %v95_v51 = vcombine.high %v77_v45, %v91_v46  ;;  %v1057_v0 = vld [vmem:[#allocation5 + $0x110] sm:$0xff]   ;;  %v1060_v3 = vld [vmem:[#allocation5 + $0x1d8] sm:$0xff]   ;;  %v1063_v6 = vld [vmem:[#allocation5 + $0x160] sm:$0xff]  }
  0x3a   :  { %941 = vmatprep.subr.bf16.mxu1 %v1026_v17  ;;  %v94_v52 = vcombine.low %v77_v45, %v91_v46  ;;  %v1058_v1 = vld [vmem:[#allocation5 + $0x190] sm:$0xff]   ;;  %v1061_v4 = vld [vmem:[#allocation5 + $0x118] sm:$0xff]   ;;  %v1064_v7 = vld [vmem:[#allocation5 + $0x1e0] sm:$0xff]  }
  0x3b   :  { %v141_v54 = vpack.c.bf16 %v93_v48, %v93_v48  ;;  %v140_v55 = vpack.c.bf16 %v92_v49, %v92_v49  ;;  %v143_v57 = vpack.c.bf16 %v95_v51, %v95_v51  ;;  %v1062_v5 = vld [vmem:[#allocation5 + $0x198] sm:$0xff]   ;;  %v1065_v8 = vld [vmem:[#allocation5 + $0x120] sm:$0xff]   ;;  %v1067_v10 = vld [vmem:[#allocation5 + $0x168] sm:$0xff]  }
  0x3c   :  { %920 = vmatpush3.bf16.msra.mxu0 %v1027_v18  ;;  %v142_v58 = vpack.c.bf16 %v94_v52, %v94_v52  ;;  %v1066_v9 = vld [vmem:[#allocation5 + $0x1a0] sm:$0xff]   ;;  %v1068_v11 = vld [vmem:[#allocation5 + $0x1e8] sm:$0xff]   ;;  %v1071_v14 = vld [vmem:[#allocation5 + $0x170] sm:$0xff]  }
  0x3d   :  { %942 = vmatpush3.bf16.msra.mxu1 %v1028_v19  ;;  %921 = vmatprep.subr.bf16.mxu0 %v1029_v20  ;;  %v1069_v12 = vld [vmem:[#allocation5 + $0x128] sm:$0xff]   ;;  %v1072_v15 = vld [vmem:[#allocation5 + $0x1f0] sm:$0xff]   ;;  %v1075_v18 = vld [vmem:[#allocation5 + $0x178] sm:$0xff]  }
  0x3e   :  { %943 = vmatprep.subr.bf16.mxu1 %v1030_v21  ;;  %699 = vmatprep.mubr.bf16.mxu0 %v141_v54  ;;  %v1070_v13 = vld [vmem:[#allocation5 + $0x1a8] sm:$0xff]   ;;  %v1073_v16 = vld [vmem:[#allocation5 + $0x130] sm:$0xff]   ;;  %v1076_v19 = vld [vmem:[#allocation5 + $0x1f8] sm:$0xff]  }
  0x3f   :  { %739 = vmatprep.mubr.bf16.mxu1 %v143_v57  ;;  %v1074_v17 = vld [vmem:[#allocation5 + $0x1b0] sm:$0xff]   ;;  %v1077_v20 = vld [vmem:[#allocation5 + $0x138] sm:$0xff]   ;;  %v846_v41 = vld [vmem:[%s1238_s2] ss:$0 sm:$0xff] }
  0x40   :  { %922 = vmatpush3.bf16.msra.mxu0 %v1031_v22  ;;  %v1078_v21 = vld [vmem:[#allocation5 + $0x1b8] sm:$0xff]  }
  0x41   :  { %944 = vmatpush3.bf16.msra.mxu1 %v1032_v23  ;;  %923 = vmatprep.subr.bf16.mxu0 %v1033_v27  ;;  %v1079_v22 = vld [vmem:[#allocation2 + $0x8] ss:$16 sps:$4 sm:$0xff]   ;;  %v1083_v24 = vld [vmem:[#allocation2 + $0xc] ss:$16 sps:$4 sm:$0xff]  }
  0x42   :  { %945 = vmatprep.subr.bf16.mxu1 %v1034_v28  ;;  %v1081_v23 = vld [vmem:[#allocation2 + $0x28] ss:$16 sps:$4 sm:$0xff]   ;;  %v1084_v25 = vld [vmem:[#allocation2 + $0x2c] ss:$16 sps:$4 sm:$0xff]   ;;  %v106_v26 = vrot.slane %v1079_v22, %v1211_v37  ;;  %v113_v28 = vrot.slane %v1083_v24, %v1211_v37 }
  0x43   :  { %v120_v27 = vrot.slane %v1081_v23, %v1211_v37 }
  0x44   :  { %924 = vmatpush3.bf16.msra.mxu0 %v1035_v29  ;;  %v127_v29 = vrot.slane %v1084_v25, %v1211_v37 }
  0x45   :  { %946 = vmatpush3.bf16.msra.mxu1 %v1036_v30  ;;  %925 = vmatprep.subr.bf16.mxu0 %v1037_v33  ;;  %v129_v30 = vcombine.high %v106_v26, %v120_v27  ;;  %v128_v31 = vcombine.low %v106_v26, %v120_v27 }
  0x46   :  { %947 = vmatprep.subr.bf16.mxu1 %v1038_v34  ;;  %v131_v32 = vcombine.high %v113_v28, %v127_v29  ;;  %v130_v33 = vcombine.low %v113_v28, %v127_v29 }
  0x47   :  { %v145_v34 = vpack.c.bf16 %v129_v30, %v129_v30 }
  0x48   :  { %926 = vmatpush3.bf16.msra.mxu0 %v1039_v35  ;;  %v144_v35 = vpack.c.bf16 %v128_v31, %v128_v31  ;;  %v146_v38 = vpack.c.bf16 %v130_v33, %v130_v33 }
  0x49   :  { %948 = vmatpush3.bf16.msra.mxu1 %v1040_v36  ;;  %955 = vmatprep.subr.bf16.mxu0 %v1047_v44  ;;  %v147_v36 = vpack.c.bf16 %v131_v32, %v131_v32 }
  0x4a   :  { %977 = vmatprep.subr.bf16.mxu1 %v1048_v47 }
  0x4b   :  { %700 = vmatmul.mubr.bf16.vlgmr.msra.gmra.mrb[0].mxu0 %v140_v55 }
  0x4c   :  { %740 = vmatmul.mubr.bf16.vlgmr.msra.gmra.mrb[0].mxu1 %v142_v58  ;;  %956 = vmatpush3.bf16.msra.mxu0 %v1049_v50 }
  0x4d   :  { %978 = vmatpush3.bf16.msra.mxu1 %v1050_v53  ;;  %957 = vmatprep.subr.bf16.mxu0 %v1051_v56 }
  0x4e   :  { %979 = vmatprep.subr.bf16.mxu1 %v1052_v59  ;;  %779 = vmatprep.mubr.bf16.mxu0 %v145_v34 }
  0x4f   :  { %819 = vmatprep.mubr.bf16.mxu1 %v147_v36 }
  0x50   :  { %958 = vmatpush3.bf16.msra.mxu0 %v1053_v60 }
  0x51   :  { %980 = vmatpush3.bf16.msra.mxu1 %v1054_v61  ;;  %959 = vmatprep.subr.bf16.mxu0 %v1055_v62 }
  0x52   :  { %981 = vmatprep.subr.bf16.mxu1 %v1056_v63 }
  0x54   :  { %960 = vmatpush3.bf16.msra.mxu0 %v1057_v0 }
  0x55   :  { %982 = vmatpush3.bf16.msra.mxu1 %v1058_v1  ;;  %961 = vmatprep.subr.bf16.mxu0 %v1059_v2 }
  0x56   :  { %983 = vmatprep.subr.bf16.mxu1 %v1060_v3 }
  0x58   :  { %962 = vmatpush3.bf16.msra.mxu0 %v1061_v4 }
  0x59   :  { %984 = vmatpush3.bf16.msra.mxu1 %v1062_v5  ;;  %963 = vmatprep.subr.bf16.mxu0 %v1063_v6 }
  0x5a   :  { %985 = vmatprep.subr.bf16.mxu1 %v1064_v7 }
  0x5c   :  { %964 = vmatpush3.bf16.msra.mxu0 %v1065_v8 }
  0x5d   :  { %986 = vmatpush3.bf16.msra.mxu1 %v1066_v9  ;;  %965 = vmatprep.subr.bf16.mxu0 %v1067_v10 }
  0x5e   :  { %987 = vmatprep.subr.bf16.mxu1 %v1068_v11 }
  0x60   :  { %966 = vmatpush3.bf16.msra.mxu0 %v1069_v12 }
  0x61   :  { %988 = vmatpush3.bf16.msra.mxu1 %v1070_v13  ;;  %967 = vmatprep.subr.bf16.mxu0 %v1071_v14 }
  0x62   :  { %989 = vmatprep.subr.bf16.mxu1 %v1072_v15 }
  0x64   :  { %968 = vmatpush3.bf16.msra.mxu0 %v1073_v16 }
  0x65   :  { %990 = vmatpush3.bf16.msra.mxu1 %v1074_v17  ;;  %969 = vmatprep.subr.bf16.mxu0 %v1075_v18 }
  0x66   :  { %991 = vmatprep.subr.bf16.mxu1 %v1076_v19 }
  0x68   :  { %970 = vmatpush3.bf16.msra.mxu0 %v1077_v20 }
  0x69   :  { %992 = vmatpush3.bf16.msra.mxu1 %v1078_v21 }
  0x6b   :  { %780 = vmatmul.mubr.bf16.vlgmr.msra.gmra.mrb[4].mxu0 %v144_v35 }
  0x6c   :  { %820 = vmatmul.mubr.bf16.vlgmr.msra.gmra.mrb[4].mxu1 %v146_v38 }
 0x11e   :  { %v927_v39 = vpop.f32.mrb[0].mxu0 }
 0x11f   :  { %v949_v40 = vpop.f32.mrb[0].mxu1  ;;  %v928_v37 = vpop.f32.mrb[1].mxu0 }
 0x120   :  { %v929_v42 = vadd.f32 %v928_v37, %v927_v39  ;;  %v950_v43 = vpop.f32.mrb[1].mxu1  ;;  %v930_v44 = vpop.f32.mrb[2].mxu0 }
 0x121   :  { %v951_v45 = vadd.f32 %v950_v43, %v949_v40  ;;  %v952_v46 = vpop.f32.mrb[2].mxu1  ;;  %v931_v47 = vpop.f32.mrb[3].mxu0 }
 0x122   :  { %v702_v48 = vadd.f32 %v929_v42, %v846_v41  ;;  %v953_v49 = vpop.f32.mrb[3].mxu1 }
 0x124   :  { %v742_v50 = vadd.f32 %v951_v45, %v702_v48 }
 0x13e   :  { %v971_v51 = vpop.f32.mrb[4].mxu0 }
 0x13f   :  { %v993_v52 = vpop.f32.mrb[4].mxu1  ;;  %v972_v53 = vpop.f32.mrb[5].mxu0 }
 0x140   :  { %v973_v54 = vadd.f32 %v972_v53, %v971_v51  ;;  %v994_v55 = vpop.f32.mrb[5].mxu1  ;;  %v974_v56 = vpop.f32.mrb[6].mxu0 }
 0x141   :  { %v995_v57 = vadd.f32 %v994_v55, %v993_v52  ;;  %v996_v58 = vpop.f32.mrb[6].mxu1  ;;  %v975_v59 = vpop.f32.mrb[7].mxu0 }
 0x142   :  { %v782_v60 = vadd.f32 %v973_v54, %v742_v50  ;;  %v997_v61 = vpop.f32.mrb[7].mxu1 }
 0x144   :  { %v822_v62 = vadd.f32 %v995_v57, %v782_v60 }
 0x146   :  { %827 = vst [vmem:[#allocation7] sm:$0xff] %v822_v62 }
 0x147   :  { %832 = vsyncadd [#allocation4], 96  ;;  %s1164_s2 = smov [#allocation7]  }
 0x148   :  { %s833_s14 = sshll.u32 %s1164_s2, 4  ;;  %s834_s14 = int_to_ptr.vmem [resolvable:$true] %s833_s14 }
 0x149   :  { %s1129_s15 = scalar_lea.vmem %s834_s14, 32  ;;  %s1133_s16 = scalar_lea.vmem %s834_s14, 128 }
 0x14a   :  { %p1130_p2 = scmp.ne.s32.totalorder %s834_s14, %s1129_s15  ;;  %p1134_p3 = scmp.lt.s32.totalorder %s834_s14, %s834_s14 }
 0x14b   :  { %p1135_p4 = scmp.lt.s32.totalorder %s1133_s16, %s1129_s15 }
 0x14d   :  { %p1136_p5 = por %p1135_p4, %p1134_p3 }
 0x14f   :  { %p1137_p6 = pnand %p1136_p5, %p1130_p2 }
 0x151   :  { %1140 = shalt.err (!%p1137_p6)
}
 0x152   :  { %s1141_s19 = scalar_lea.hbm %s1239_s3, 32 }
 0x153   :  { %p1142_p7 = scmp.ne.s32.totalorder %s1239_s3, %s1141_s19  ;;  %p1145_p8 = scmp.lt.u32.totalorder %s1141_s19, %s1239_s3 }
 0x155   :  { %p1147_p9 = pnand %p1145_p8, %p1142_p7 }
 0x157   :  { %1150 = shalt.err (!%p1147_p9)
}
 0x158   :  { %s1165_s24 = smov 32   ;;  %s1166_s25 = smov 2  }
 0x159   :  { %839 = dma.vmem_to_hbm [thread:$0]  %s834_s14, 32, %s1239_s3, [#allocation4], %s1165_s24, %s1165_s24, %s1166_s25  }
 0x15a   :  { %1155 = dma.done.wait [#allocation4], 128  }
 0x15b   :  { %1156 = vsyncadd [#allocation4], 4294967168 }
 0x15c   :  { %843 = vsyncpa [#allocation3], 1 }
 0x15d   :  { %844 = vsyncpa [#allocation6], 1 }
 0x15e   :  { %845 = vsyncpa [#allocation4], 1 }

// kernel: tpu_custom_call.1
= control target key start
LH: loop header
LB: loop body
LE: loop exit
PB: predicated region body
PF: predicated region fallthrough
CT: control target
= control target key end

     0   :  { %8 = vsyncpa [#allocation3], 0  ;;  %s1236_s0 = inlined_call_operand.hbm [shape: f32[2,1024], index: 0, kind: input, shape index: {}]   ;;  %s1237_s1 = inlined_call_operand.hbm [shape: bf16[1024,128], index: 1, kind: input, shape index: {}]   ;;  %s1238_s2 = inlined_call_operand.vmem [shape: f32[1,128], index: 2, kind: input, shape index: {}]   ;;  %s1239_s3 = inlined_call_operand.hbm [shape: f32[2,128], index: 3, kind: output, shape index: {}]  }
   0x1   :  { %9 = vsyncpa [#allocation6], 0 }
   0x2   :  { %10 = vsyncpa [#allocation4], 0 }
   0x3   :  { %15 = vsyncadd [#allocation3], 768  ;;  %s1157_s12 = smov [#allocation2]   ;;  %s1085_s16 = scalar_lea.hbm %s1236_s0, 256 }
   0x4   :  { %s16_s13 = sshll.u32 %s1157_s12, 4  ;;  %p1086_p0 = scmp.ne.s32.totalorder %s1236_s0, %s1085_s16  ;;  %s17_s13 = int_to_ptr.vmem [resolvable:$true] %s16_s13 }
   0x5   :  { %p1089_p1 = scmp.lt.u32.totalorder %s1085_s16, %s1236_s0 }
   0x7   :  { %p1091_p2 = pnand %p1089_p1, %p1086_p0 }
   0x9   :  { %1094 = shalt.err (!%p1091_p2)
}
   0xa   :  { %s1095_s21 = scalar_lea.vmem %s17_s13, 256  ;;  %s1099_s22 = scalar_lea.vmem %s17_s13, 1024 }
   0xb   :  { %p1096_p3 = scmp.ne.s32.totalorder %s17_s13, %s1095_s21  ;;  %p1100_p4 = scmp.lt.s32.totalorder %s17_s13, %s17_s13 }
   0xc   :  { %p1101_p5 = scmp.lt.s32.totalorder %s1099_s22, %s1095_s21 }
   0xe   :  { %p1102_p6 = por %p1101_p5, %p1100_p4 }
  0x10   :  { %p1103_p7 = pnand %p1102_p6, %p1096_p3 }
  0x12   :  { %1106 = shalt.err (!%p1103_p7)
}
  0x13   :  { %s1158_s23 = smov 256   ;;  %s1159_s24 = smov 16  }
  0x14   :  { %22 = dma.hbm_to_vmem [thread:$0]  %s1236_s0, 256, %s17_s13, [#allocation3], %s1158_s23, %s1158_s23, %s1159_s24  }
  0x15   :  { %s1160_s27 = smov [#allocation5]   ;;  %s1107_s4 = scalar_lea.hbm %s1237_s1, 8192 }
  0x16   :  { %s28_s28 = sshll.u32 %s1160_s27, 4  ;;  %p1108_p8 = scmp.ne.s32.totalorder %s1237_s1, %s1107_s4  ;;  %s29_s28 = int_to_ptr.vmem [resolvable:$true] %s28_s28 }
  0x17   :  { %p1111_p9 = scmp.lt.u32.totalorder %s1107_s4, %s1237_s1 }
  0x19   :  { %p1113_p10 = pnand %p1111_p9, %p1108_p8 }
  0x1b   :  { %1116 = shalt.err (!%p1113_p10)
}
  0x1c   :  { %s1117_s9 = scalar_lea.vmem %s29_s28, 8192  ;;  %p1122_p12 = scmp.lt.s32.totalorder %s29_s28, %s29_s28 }
  0x1d   :  { %p1118_p11 = scmp.ne.s32.totalorder %s29_s28, %s1117_s9  ;;  %p1123_p13 = scmp.lt.s32.totalorder %s1117_s9, %s1117_s9 }
  0x1f   :  { %p1124_p0 = por %p1123_p13, %p1122_p12 }
  0x21   :  { %p1125_p1 = pnand %p1124_p0, %p1118_p11 }
  0x23   :  { %1128 = shalt.err (!%p1125_p1)
}
  0x24   :  { %s1161_s0 = smov 64   ;;  %s1162_s10 = smov 4  }
  0x25   :  { %34 = dma.hbm_to_vmem [thread:$0]  %s1237_s1, 8192, %s29_s28, [#allocation6], %s1161_s0, %s1161_s0, %s1162_s10  }
  0x26   :  { %1151 = dma.done.wait [#allocation3], 1024  }
  0x27   :  { %1152 = vsyncadd [#allocation3], 4294966272 }
  0x28   :  { %1153 = dma.done.wait [#allocation6], 8192  }
  0x29   :  { %1154 = vsyncadd [#allocation6], 4294959104  ;;  %v1009_v0 = vld [vmem:[#allocation5 + $0x40] sm:$0xff]   ;;  %v1013_v4 = vld [vmem:[#allocation5 + $0x48] sm:$0xff]   ;;  %v1163_v24 = vmov 1983009808   ;;  %v67_v26 = vlaneseq }
  0x2a   :  { %v1010_v1 = vld [vmem:[#allocation5 + $0xc0] sm:$0xff]   ;;  %911 = vmatprep.subr.bf16.mxu0 %v1009_v0  ;;  %v1014_v5 = vld [vmem:[#allocation5 + $0xc8] sm:$0xff]   ;;  %v1017_v8 = vld [vmem:[#allocation5 + $0x50] sm:$0xff]   ;;  %v65_v25 = vunpack.c.l.s4 %v1163_v24 }
  0x2b   :  { %v1011_v2 = vld [vmem:[#allocation5] sm:$0xff]   ;;  %933 = vmatprep.subr.bf16.mxu1 %v1010_v1  ;;  %v1015_v6 = vld [vmem:[#allocation5 + $0x8] sm:$0xff]   ;;  %v1018_v9 = vld [vmem:[#allocation5 + $0xd0] sm:$0xff]   ;;  %v68_v32 = vshrl.u32 %v67_v26, 7 }
  0x2c   :  { %v1012_v3 = vld [vmem:[#allocation5 + $0x80] sm:$0xff]   ;;  %912 = vmatpush3.bf16.msra.mxu0 %v1011_v2  ;;  %v1016_v7 = vld [vmem:[#allocation5 + $0x88] sm:$0xff]   ;;  %v1019_v10 = vld [vmem:[#allocation5 + $0x10] sm:$0xff]   ;;  %v66_v31 = vunpack.c.0.s8 %v65_v25 }
  0x2d   :  { %934 = vmatpush3.bf16.msra.mxu1 %v1012_v3  ;;  %913 = vmatprep.subr.bf16.mxu0 %v1013_v4  ;;  %v1020_v11 = vld [vmem:[#allocation5 + $0x90] sm:$0xff]   ;;  %v1021_v12 = vld [vmem:[#allocation5 + $0x58] sm:$0xff]   ;;  %v1025_v16 = vld [vmem:[#allocation5 + $0x60] sm:$0xff]  }
  0x2e   :  { %935 = vmatprep.subr.bf16.mxu1 %v1014_v5  ;;  %v1022_v13 = vld [vmem:[#allocation5 + $0xd8] sm:$0xff]   ;;  %v1026_v17 = vld [vmem:[#allocation5 + $0xe0] sm:$0xff]   ;;  %v1029_v20 = vld [vmem:[#allocation5 + $0x68] sm:$0xff]   ;;  %v1211_v37 = vsub.s32 %v66_v31, %v68_v32 }
  0x2f   :  { %v1023_v14 = vld [vmem:[#allocation5 + $0x18] sm:$0xff]   ;;  %v1027_v18 = vld [vmem:[#allocation5 + $0x20] sm:$0xff]   ;;  %v1030_v21 = vld [vmem:[#allocation5 + $0xe8] sm:$0xff]  }
  0x30   :  { %914 = vmatpush3.bf16.msra.mxu0 %v1015_v6  ;;  %v1024_v15 = vld [vmem:[#allocation5 + $0x98] sm:$0xff]   ;;  %v1028_v19 = vld [vmem:[#allocation5 + $0xa0] sm:$0xff]   ;;  %v1031_v22 = vld [vmem:[#allocation5 + $0x28] sm:$0xff]  }
  0x31   :  { %936 = vmatpush3.bf16.msra.mxu1 %v1016_v7  ;;  %915 = vmatprep.subr.bf16.mxu0 %v1017_v8  ;;  %v1032_v23 = vld [vmem:[#allocation5 + $0xa8] sm:$0xff]   ;;  %v1033_v27 = vld [vmem:[#allocation5 + $0x70] sm:$0xff]   ;;  %v1037_v33 = vld [vmem:[#allocation5 + $0x78] sm:$0xff]  }
  0x32   :  { %937 = vmatprep.subr.bf16.mxu1 %v1018_v9  ;;  %v1034_v28 = vld [vmem:[#allocation5 + $0xf0] sm:$0xff]   ;;  %v1038_v34 = vld [vmem:[#allocation5 + $0xf8] sm:$0xff]   ;;  %v1047_v44 = vld [vmem:[#allocation5 + $0x140] sm:$0xff]  }
  0x33   :  { %v1035_v29 = vld [vmem:[#allocation5 + $0x30] sm:$0xff]   ;;  %v1039_v35 = vld [vmem:[#allocation5 + $0x38] sm:$0xff]   ;;  %v1048_v47 = vld [vmem:[#allocation5 + $0x1c0] sm:$0xff]  }
  0x34   :  { %916 = vmatpush3.bf16.msra.mxu0 %v1019_v10  ;;  %v1036_v30 = vld [vmem:[#allocation5 + $0xb0] sm:$0xff]   ;;  %v1040_v36 = vld [vmem:[#allocation5 + $0xb8] sm:$0xff]   ;;  %v1049_v50 = vld [vmem:[#allocation5 + $0x100] sm:$0xff]  }
  0x35   :  { %938 = vmatpush3.bf16.msra.mxu1 %v1020_v11  ;;  %917 = vmatprep.subr.bf16.mxu0 %v1021_v12  ;;  %v1041_v38 = vld [vmem:[#allocation2] ss:$16 sps:$4 sm:$0xff]   ;;  %v1045_v40 = vld [vmem:[#allocation2 + $0x4] ss:$16 sps:$4 sm:$0xff]   ;;  %v1051_v56 = vld [vmem:[#allocation5 + $0x148] sm:$0xff]  }
  0x36   :  { %939 = vmatprep.subr.bf16.mxu1 %v1022_v13  ;;  %v1043_v39 = vld [vmem:[#allocation2 + $0x20] ss:$16 sps:$4 sm:$0xff]   ;;  %v1046_v41 = vld [vmem:[#allocation2 + $0x24] ss:$16 sps:$4 sm:$0xff]   ;;  %v70_v42 = vrot.slane %v1041_v38, %v1211_v37  ;;  %v77_v45 = vrot.slane %v1045_v40, %v1211_v37  ;;  %v1052_v59 = vld [vmem:[#allocation5 + $0x1c8] sm:$0xff]  }
  0x37   :  { %v84_v43 = vrot.slane %v1043_v39, %v1211_v37  ;;  %v91_v46 = vrot.slane %v1046_v41, %v1211_v37  ;;  %v1050_v53 = vld [vmem:[#allocation5 + $0x180] sm:$0xff]   ;;  %v1053_v60 = vld [vmem:[#allocation5 + $0x108] sm:$0xff]   ;;  %v1055_v62 = vld [vmem:[#allocation5 + $0x150] sm:$0xff]  }
  0x38   :  { %918 = vmatpush3.bf16.msra.mxu0 %v1023_v14  ;;  %v1054_v61 = vld [vmem:[#allocation5 + $0x188] sm:$0xff]   ;;  %v1056_v63 = vld [vmem:[#allocation5 + $0x1d0] sm:$0xff]   ;;  %v1059_v2 = vld [vmem:[#allocation5 + $0x158] sm:$0xff]  }
  0x39   :  { %940 = vmatpush3.bf16.msra.mxu1 %v1024_v15  ;;  %919 = vmatprep.subr.bf16.mxu0 %v1025_v16  ;;  %v93_v48 = vcombine.high %v70_v42, %v84_v43  ;;  %v92_v49 = vcombine.low %v70_v42, %v84_v43  ;;  %v95_v51 = vcombine.high %v77_v45, %v91_v46  ;;  %v1057_v0 = vld [vmem:[#allocation5 + $0x110] sm:$0xff]   ;;  %v1060_v3 = vld [vmem:[#allocation5 + $0x1d8] sm:$0xff]   ;;  %v1063_v6 = vld [vmem:[#allocation5 + $0x160] sm:$0xff]  }
  0x3a   :  { %941 = vmatprep.subr.bf16.mxu1 %v1026_v17  ;;  %v94_v52 = vcombine.low %v77_v45, %v91_v46  ;;  %v1058_v1 = vld [vmem:[#allocation5 + $0x190] sm:$0xff]   ;;  %v1061_v4 = vld [vmem:[#allocation5 + $0x118] sm:$0xff]   ;;  %v1064_v7 = vld [vmem:[#allocation5 + $0x1e0] sm:$0xff]  }
  0x3b   :  { %v141_v54 = vpack.c.bf16 %v93_v48, %v93_v48  ;;  %v140_v55 = vpack.c.bf16 %v92_v49, %v92_v49  ;;  %v143_v57 = vpack.c.bf16 %v95_v51, %v95_v51  ;;  %v1062_v5 = vld [vmem:[#allocation5 + $0x198] sm:$0xff]   ;;  %v1065_v8 = vld [vmem:[#allocation5 + $0x120] sm:$0xff]   ;;  %v1067_v10 = vld [vmem:[#allocation5 + $0x168] sm:$0xff]  }
  0x3c   :  { %920 = vmatpush3.bf16.msra.mxu0 %v1027_v18  ;;  %v142_v58 = vpack.c.bf16 %v94_v52, %v94_v52  ;;  %v1066_v9 = vld [vmem:[#allocation5 + $0x1a0] sm:$0xff]   ;;  %v1068_v11 = vld [vmem:[#allocation5 + $0x1e8] sm:$0xff]   ;;  %v1071_v14 = vld [vmem:[#allocation5 + $0x170] sm:$0xff]  }
  0x3d   :  { %942 = vmatpush3.bf16.msra.mxu1 %v1028_v19  ;;  %921 = vmatprep.subr.bf16.mxu0 %v1029_v20  ;;  %v1069_v12 = vld [vmem:[#allocation5 + $0x128] sm:$0xff]   ;;  %v1072_v15 = vld [vmem:[#allocation5 + $0x1f0] sm:$0xff]   ;;  %v1075_v18 = vld [vmem:[#allocation5 + $0x178] sm:$0xff]  }
  0x3e   :  { %943 = vmatprep.subr.bf16.mxu1 %v1030_v21  ;;  %699 = vmatprep.mubr.bf16.mxu0 %v141_v54  ;;  %v1070_v13 = vld [vmem:[#allocation5 + $0x1a8] sm:$0xff]   ;;  %v1073_v16 = vld [vmem:[#allocation5 + $0x130] sm:$0xff]   ;;  %v1076_v19 = vld [vmem:[#allocation5 + $0x1f8] sm:$0xff]  }
  0x3f   :  { %739 = vmatprep.mubr.bf16.mxu1 %v143_v57  ;;  %v1074_v17 = vld [vmem:[#allocation5 + $0x1b0] sm:$0xff]   ;;  %v1077_v20 = vld [vmem:[#allocation5 + $0x138] sm:$0xff]   ;;  %v846_v41 = vld [vmem:[%s1238_s2] ss:$0 sm:$0xff] }
  0x40   :  { %922 = vmatpush3.bf16.msra.mxu0 %v1031_v22  ;;  %v1078_v21 = vld [vmem:[#allocation5 + $0x1b8] sm:$0xff]  }
  0x41   :  { %944 = vmatpush3.bf16.msra.mxu1 %v1032_v23  ;;  %923 = vmatprep.subr.bf16.mxu0 %v1033_v27  ;;  %v1079_v22 = vld [vmem:[#allocation2 + $0x8] ss:$16 sps:$4 sm:$0xff]   ;;  %v1083_v24 = vld [vmem:[#allocation2 + $0xc] ss:$16 sps:$4 sm:$0xff]  }
  0x42   :  { %945 = vmatprep.subr.bf16.mxu1 %v1034_v28  ;;  %v1081_v23 = vld [vmem:[#allocation2 + $0x28] ss:$16 sps:$4 sm:$0xff]   ;;  %v1084_v25 = vld [vmem:[#allocation2 + $0x2c] ss:$16 sps:$4 sm:$0xff]   ;;  %v106_v26 = vrot.slane %v1079_v22, %v1211_v37  ;;  %v113_v28 = vrot.slane %v1083_v24, %v1211_v37 }
  0x43   :  { %v120_v27 = vrot.slane %v1081_v23, %v1211_v37 }
  0x44   :  { %924 = vmatpush3.bf16.msra.mxu0 %v1035_v29  ;;  %v127_v29 = vrot.slane %v1084_v25, %v1211_v37 }
  0x45   :  { %946 = vmatpush3.bf16.msra.mxu1 %v1036_v30  ;;  %925 = vmatprep.subr.bf16.mxu0 %v1037_v33  ;;  %v129_v30 = vcombine.high %v106_v26, %v120_v27  ;;  %v128_v31 = vcombine.low %v106_v26, %v120_v27 }
  0x46   :  { %947 = vmatprep.subr.bf16.mxu1 %v1038_v34  ;;  %v131_v32 = vcombine.high %v113_v28, %v127_v29  ;;  %v130_v33 = vcombine.low %v113_v28, %v127_v29 }
  0x47   :  { %v145_v34 = vpack.c.bf16 %v129_v30, %v129_v30 }
  0x48   :  { %926 = vmatpush3.bf16.msra.mxu0 %v1039_v35  ;;  %v144_v35 = vpack.c.bf16 %v128_v31, %v128_v31  ;;  %v146_v38 = vpack.c.bf16 %v130_v33, %v130_v33 }
  0x49   :  { %948 = vmatpush3.bf16.msra.mxu1 %v1040_v36  ;;  %955 = vmatprep.subr.bf16.mxu0 %v1047_v44  ;;  %v147_v36 = vpack.c.bf16 %v131_v32, %v131_v32 }
  0x4a   :  { %977 = vmatprep.subr.bf16.mxu1 %v1048_v47 }
  0x4b   :  { %700 = vmatmul.mubr.bf16.vlgmr.msra.gmra.mrb[0].mxu0 %v140_v55 }
  0x4c   :  { %740 = vmatmul.mubr.bf16.vlgmr.msra.gmra.mrb[0].mxu1 %v142_v58  ;;  %956 = vmatpush3.bf16.msra.mxu0 %v1049_v50 }
  0x4d   :  { %978 = vmatpush3.bf16.msra.mxu1 %v1050_v53  ;;  %957 = vmatprep.subr.bf16.mxu0 %v1051_v56 }
  0x4e   :  { %979 = vmatprep.subr.bf16.mxu1 %v1052_v59  ;;  %779 = vmatprep.mubr.bf16.mxu0 %v145_v34 }
  0x4f   :  { %819 = vmatprep.mubr.bf16.mxu1 %v147_v36 }
  0x50   :  { %958 = vmatpush3.bf16.msra.mxu0 %v1053_v60 }
  0x51   :  { %980 = vmatpush3.bf16.msra.mxu1 %v1054_v61  ;;  %959 = vmatprep.subr.bf16.mxu0 %v1055_v62 }
  0x52   :  { %981 = vmatprep.subr.bf16.mxu1 %v1056_v63 }
  0x54   :  { %960 = vmatpush3.bf16.msra.mxu0 %v1057_v0 }
  0x55   :  { %982 = vmatpush3.bf16.msra.mxu1 %v1058_v1  ;;  %961 = vmatprep.subr.bf16.mxu0 %v1059_v2 }
  0x56   :  { %983 = vmatprep.subr.bf16.mxu1 %v1060_v3 }
  0x58   :  { %962 = vmatpush3.bf16.msra.mxu0 %v1061_v4 }
  0x59   :  { %984 = vmatpush3.bf16.msra.mxu1 %v1062_v5  ;;  %963 = vmatprep.subr.bf16.mxu0 %v1063_v6 }
  0x5a   :  { %985 = vmatprep.subr.bf16.mxu1 %v1064_v7 }
  0x5c   :  { %964 = vmatpush3.bf16.msra.mxu0 %v1065_v8 }
  0x5d   :  { %986 = vmatpush3.bf16.msra.mxu1 %v1066_v9  ;;  %965 = vmatprep.subr.bf16.mxu0 %v1067_v10 }
  0x5e   :  { %987 = vmatprep.subr.bf16.mxu1 %v1068_v11 }
  0x60   :  { %966 = vmatpush3.bf16.msra.mxu0 %v1069_v12 }
  0x61   :  { %988 = vmatpush3.bf16.msra.mxu1 %v1070_v13  ;;  %967 = vmatprep.subr.bf16.mxu0 %v1071_v14 }
  0x62   :  { %989 = vmatprep.subr.bf16.mxu1 %v1072_v15 }
  0x64   :  { %968 = vmatpush3.bf16.msra.mxu0 %v1073_v16 }
  0x65   :  { %990 = vmatpush3.bf16.msra.mxu1 %v1074_v17  ;;  %969 = vmatprep.subr.bf16.mxu0 %v1075_v18 }
  0x66   :  { %991 = vmatprep.subr.bf16.mxu1 %v1076_v19 }
  0x68   :  { %970 = vmatpush3.bf16.msra.mxu0 %v1077_v20 }
  0x69   :  { %992 = vmatpush3.bf16.msra.mxu1 %v1078_v21 }
  0x6b   :  { %780 = vmatmul.mubr.bf16.vlgmr.msra.gmra.mrb[4].mxu0 %v144_v35 }
  0x6c   :  { %820 = vmatmul.mubr.bf16.vlgmr.msra.gmra.mrb[4].mxu1 %v146_v38 }
 0x11e   :  { %v927_v39 = vpop.f32.mrb[0].mxu0 }
 0x11f   :  { %v949_v40 = vpop.f32.mrb[0].mxu1  ;;  %v928_v37 = vpop.f32.mrb[1].mxu0 }
 0x120   :  { %v929_v42 = vadd.f32 %v928_v37, %v927_v39  ;;  %v950_v43 = vpop.f32.mrb[1].mxu1  ;;  %v930_v44 = vpop.f32.mrb[2].mxu0 }
 0x121   :  { %v951_v45 = vadd.f32 %v950_v43, %v949_v40  ;;  %v952_v46 = vpop.f32.mrb[2].mxu1  ;;  %v931_v47 = vpop.f32.mrb[3].mxu0 }
 0x122   :  { %v702_v48 = vadd.f32 %v929_v42, %v846_v41  ;;  %v953_v49 = vpop.f32.mrb[3].mxu1 }
 0x124   :  { %v742_v50 = vadd.f32 %v951_v45, %v702_v48 }
 0x13e   :  { %v971_v51 = vpop.f32.mrb[4].mxu0 }
 0x13f   :  { %v993_v52 = vpop.f32.mrb[4].mxu1  ;;  %v972_v53 = vpop.f32.mrb[5].mxu0 }
 0x140   :  { %v973_v54 = vadd.f32 %v972_v53, %v971_v51  ;;  %v994_v55 = vpop.f32.mrb[5].mxu1  ;;  %v974_v56 = vpop.f32.mrb[6].mxu0 }
 0x141   :  { %v995_v57 = vadd.f32 %v994_v55, %v993_v52  ;;  %v996_v58 = vpop.f32.mrb[6].mxu1  ;;  %v975_v59 = vpop.f32.mrb[7].mxu0 }
 0x142   :  { %v782_v60 = vadd.f32 %v973_v54, %v742_v50  ;;  %v997_v61 = vpop.f32.mrb[7].mxu1 }
 0x144   :  { %v822_v62 = vadd.f32 %v995_v57, %v782_v60 }
 0x146   :  { %827 = vst [vmem:[#allocation7] sm:$0xff] %v822_v62 }
 0x147   :  { %832 = vsyncadd [#allocation4], 96  ;;  %s1164_s2 = smov [#allocation7]  }
 0x148   :  { %s833_s14 = sshll.u32 %s1164_s2, 4  ;;  %s834_s14 = int_to_ptr.vmem [resolvable:$true] %s833_s14 }
 0x149   :  { %s1129_s15 = scalar_lea.vmem %s834_s14, 32  ;;  %s1133_s16 = scalar_lea.vmem %s834_s14, 128 }
 0x14a   :  { %p1130_p2 = scmp.ne.s32.totalorder %s834_s14, %s1129_s15  ;;  %p1134_p3 = scmp.lt.s32.totalorder %s834_s14, %s834_s14 }
 0x14b   :  { %p1135_p4 = scmp.lt.s32.totalorder %s1133_s16, %s1129_s15 }
 0x14d   :  { %p1136_p5 = por %p1135_p4, %p1134_p3 }
 0x14f   :  { %p1137_p6 = pnand %p1136_p5, %p1130_p2 }
 0x151   :  { %1140 = shalt.err (!%p1137_p6)
}
 0x152   :  { %s1141_s19 = scalar_lea.hbm %s1239_s3, 32 }
 0x153   :  { %p1142_p7 = scmp.ne.s32.totalorder %s1239_s3, %s1141_s19  ;;  %p1145_p8 = scmp.lt.u32.totalorder %s1141_s19, %s1239_s3 }
 0x155   :  { %p1147_p9 = pnand %p1145_p8, %p1142_p7 }
 0x157   :  { %1150 = shalt.err (!%p1147_p9)
}
 0x158   :  { %s1165_s24 = smov 32   ;;  %s1166_s25 = smov 2  }
 0x159   :  { %839 = dma.vmem_to_hbm [thread:$0]  %s834_s14, 32, %s1239_s3, [#allocation4], %s1165_s24, %s1165_s24, %s1166_s25  }
 0x15a   :  { %1155 = dma.done.wait [#allocation4], 128  }
 0x15b   :  { %1156 = vsyncadd [#allocation4], 4294967168 }
 0x15c   :  { %843 = vsyncpa [#allocation3], 1 }
 0x15d   :  { %844 = vsyncpa [#allocation6], 1 }
 0x15e   :  { %845 = vsyncpa [#allocation4], 1 }

</bundles_post_ra>
